<compile_context>
chip_gen: v7x
topology: tpu7x:2x2x1
jax: 0.10.0
libtpu: 0.0.40
codegen_flags: <defaults>
</compile_context>

<pallas_src>
import functools

import jax
import jax.numpy as jnp
from jax import lax
from jax.experimental import pallas as pl
from jax.experimental.pallas import tpu as pltpu

DIN = 4
DOUT = 12
DOUT_PAD = 128      # pad head output to a full lane width -> unmasked, lane-dense stores
HID = 32
NEG_LARGE = -1000.0


def _round_up(n, m):
    return ((n + m - 1) // m) * m


def _rnn_head_kernel(T, bB, x_ref, h0_ref, wih_ref, whh_ref, brnn_ref,
                     wlin_ref, blin_ref, out_ref, state_ref, y_ref):
    """Fused vanilla-RNN recurrence + linear head for one batch tile.

    x_ref    : (T, bB, DIN)      f32   time-major inputs
    h0_ref   : (bB, HID)         f32
    wih_ref  : (DIN, HID)        bf16
    whh_ref  : (HID, HID)        bf16
    brnn_ref : (1, HID)          f32   (b_ih + b_hh)
    wlin_ref : (HID, DOUT_PAD)   bf16  (columns >= DOUT are zero)
    blin_ref : (1, DOUT_PAD)     f32
    out_ref  : (T, bB, DOUT_PAD) f32   lane-dense head-output slab
    state_ref: (bB, HID)         f32   final hidden state
    y_ref    : VMEM (T*bB, HID)  f32   scratch; holds XW, then the hidden states
    """
    whh = whh_ref[...]

    # --- Hoisted input projection: one bulk (T*bB, DIN) @ (DIN, HID) MXU pass ----
    x2d = x_ref[...].reshape(T * bB, DIN).astype(jnp.bfloat16)
    y_ref[...] = (jnp.dot(x2d, wih_ref[...], preferred_element_type=jnp.float32)
                  + brnn_ref[...])

    # --- Serial recurrence: h_t = tanh(XW_t + h_{t-1} @ W_hh) --------------------
    # Each timestep reads its XW rows from y_ref and overwrites them with h_t.
    def step(t, h):
        start = t * bB
        if not isinstance(start, int):
            start = pl.multiple_of(start, bB)
        xw_t = y_ref[pl.ds(start, bB), :]
        h = jnp.tanh(xw_t + jnp.dot(h.astype(jnp.bfloat16), whh,
                                    preferred_element_type=jnp.float32))
        y_ref[pl.ds(start, bB), :] = h
        return h

    h = h0_ref[...]
    if T <= 16:                                   # small T: static full unroll
        for t in range(T):
            h = step(t, h)
    else:                                         # large T: bounded live ranges
        unroll = 8 if T % 8 == 0 else (4 if T % 4 == 0 else (2 if T % 2 == 0 else 1))
        h = lax.fori_loop(0, T, step, h, unroll=unroll)
    state_ref[...] = h

    # --- Head: single 2-D lane-dense matmul over all timesteps -------------------
    out2d = (jnp.dot(y_ref[...].astype(jnp.bfloat16), wlin_ref[...],
                     preferred_element_type=jnp.float32)
             + blin_ref[...])                     # (T*bB, DOUT_PAD)
    out_ref[...] = out2d.reshape(T, bB, DOUT_PAD)


def rnn_trial_prob_forward(x, state, params, isITI=False, block_b=256):
    """Forward pass matching RNNModelTrialProbPrediction.forward."""
    B, T, din = x.shape
    assert din == DIN
    h0 = state[0]                                  # (B, HID); num_layers * num_dirs == 1
    N = B * T

    # Batch tile: multiple of 8 sublanes, capped at block_b (keeps VMEM bounded on v7x).
    bB = min(_round_up(block_b, 8), _round_up(B, 8))
    B_pad = _round_up(B, bB)
    grid = (B_pad // bB,)

    # Time-major layout so each timestep is one contiguous sublane-aligned row block.
    x_tm = jnp.transpose(x, (1, 0, 2)).astype(jnp.float32)      # (T, B, DIN)
    if B_pad != B:
        x_tm = jnp.pad(x_tm, ((0, 0), (0, B_pad - B), (0, 0)))
        h0 = jnp.pad(h0, ((0, B_pad - B), (0, 0)))

    # Weights: bf16 for the MXU operands; head weights padded to a full 128-lane slab.
    wih = params['w_ih'].astype(jnp.bfloat16)
    whh = params['w_hh'].astype(jnp.bfloat16)
    brnn = params['b_rnn'].astype(jnp.float32)
    wlin = jnp.zeros((HID, DOUT_PAD), jnp.bfloat16).at[:, :DOUT].set(
        params['w_lin'].astype(jnp.bfloat16))
    blin = jnp.zeros((1, DOUT_PAD), jnp.float32).at[:, :DOUT].set(
        params['b_lin'].astype(jnp.float32))

    kernel = functools.partial(_rnn_head_kernel, T, bB)
    out_slab, h_final = pl.pallas_call(
        kernel,
        grid=grid,
        out_shape=(
            jax.ShapeDtypeStruct((T, B_pad, DOUT_PAD), jnp.float32),  # head slab
            jax.ShapeDtypeStruct((B_pad, HID), jnp.float32),          # final state
        ),
        in_specs=[
            pl.BlockSpec((T, bB, DIN), lambda i: (0, i, 0)),          # x (time-major)
            pl.BlockSpec((bB, HID), lambda i: (i, 0)),                # h0
            pl.BlockSpec((DIN, HID), lambda i: (0, 0)),               # W_ih
            pl.BlockSpec((HID, HID), lambda i: (0, 0)),               # W_hh
            pl.BlockSpec((1, HID), lambda i: (0, 0)),                 # b_rnn
            pl.BlockSpec((HID, DOUT_PAD), lambda i: (0, 0)),          # W_lin (padded)
            pl.BlockSpec((1, DOUT_PAD), lambda i: (0, 0)),            # b_lin (padded)
        ],
        out_specs=(
            pl.BlockSpec((T, bB, DOUT_PAD), lambda i: (0, i, 0)),
            pl.BlockSpec((bB, HID), lambda i: (i, 0)),
        ),
        scratch_shapes=[pltpu.VMEM((T * bB, HID), jnp.float32)],
        compiler_params=pltpu.CompilerParams(
            dimension_semantics=("parallel",)),
    )(x_tm, h0, wih, whh, brnn, wlin, blin)

    # Slice off padding, restore PyTorch's (b*T + t) row order of Y.reshape(-1, H).
    out1 = jnp.transpose(out_slab[:, :B, :DOUT], (1, 0, 2)).reshape(N, DOUT)

    # ITI masking + softmax on the tiny (N, 3) policy head, done wrapper-side so the
    # kernel emits one lane-dense slab instead of four masked sub-128-lane outputs.
    logits = out1[:, :3]
    if isITI:
        logits = logits.at[:, :2].set(NEG_LARGE)
    else:
        logits = logits.at[:, 2].set(NEG_LARGE)
    policy = jax.nn.softmax(logits, axis=1)

    return {
        'policy': policy,
        'value': out1[:, 3],
        'state': h_final[:B][None, :, :],            # (1, B, HID), as nn.RNN returns
        'activations': out1[:, 7:12],
        'pred_supervised': out1[:, 4:7],
    }


def init_params(key, bias_init=6.0):
    """Deterministic parameter init (PyTorch-style U(-1/sqrt(H), 1/sqrt(H)))."""
    k = 1.0 / jnp.sqrt(jnp.float32(HID))
    ks = jax.random.split(key, 6)
    w_ih = jax.random.uniform(ks[0], (DIN, HID), jnp.float32, -k, k)
    w_hh = jax.random.uniform(ks[1], (HID, HID), jnp.float32, -k, k)
    b_ih = jax.random.uniform(ks[2], (HID,), jnp.float32, -k, k)
    b_hh = jax.random.uniform(ks[3], (HID,), jnp.float32, -k, k)
    w_lin = jax.random.uniform(ks[4], (HID, DOUT), jnp.float32, -k, k)
    b_lin = jax.random.uniform(ks[5], (DOUT,), jnp.float32, -k, k)
    b_lin = b_lin.at[0].set(bias_init)                # linear.bias[0] = bias_init (6.0)
    return {
        'w_ih': w_ih,
        'w_hh': w_hh,
        'b_rnn': (b_ih + b_hh)[None, :],
        'w_lin': w_lin,
        'b_lin': b_lin[None, :],
    }


def reference_forward(x, state, params, isITI=False):
    """Pure-JAX f32 reference of the same forward pass (sanity check)."""
    B, T, _ = x.shape
    h = state[0]
    ys = []
    for t in range(T):
        h = jnp.tanh(x[:, t, :] @ params['w_ih'] + h @ params['w_hh'] + params['b_rnn'])
        ys.append(h)
    Y = jnp.stack(ys, axis=1).reshape(B * T, HID)
    out1 = Y @ params['w_lin'] + params['b_lin']
    logits = out1[:, :3]
    if isITI:
        logits = logits.at[:, :2].set(NEG_LARGE)
    else:
        logits = logits.at[:, 2].set(NEG_LARGE)
    return {
        'policy': jax.nn.softmax(logits, axis=1),
        'value': out1[:, 3],
        'state': h[None],
        'activations': out1[:, 7:],
        'pred_supervised': out1[:, 4:7],
    }


if __name__ == "__main__":
    key = jax.random.PRNGKey(0)
    kp, kx, kh = jax.random.split(key, 3)

    B, T = 2, 8
    params = init_params(kp)
    x = jax.random.normal(kx, (B, T, DIN), jnp.float32)
    # begin_state(): sigma * rand((num_dirs*num_layers, batch, H)) with sigma = 1.0
    state = jax.random.uniform(kh, (1, B, HID), jnp.float32)

    out = rnn_trial_prob_forward(x, state, params, isITI=False)
    jax.block_until_ready(out)

    ref = reference_forward(x, state, params, isITI=False)
    for name in ('policy', 'value', 'state', 'activations', 'pred_supervised'):
        assert out[name].shape == ref[name].shape, name
        assert jnp.allclose(out[name], ref[name], atol=5e-2, rtol=5e-2), name

    # isITI branch (mask is in the wrapper -> same compiled kernel is reused)
    out_iti = rnn_trial_prob_forward(x, state, params, isITI=True)
    ref_iti = reference_forward(x, state, params, isITI=True)
    assert jnp.allclose(out_iti['policy'], ref_iti['policy'], atol=5e-2, rtol=5e-2)

    print("KERNEL_OK")
</pallas_src>

<mosaic_0001>
module attributes {stable_mosaic.version = 11 : i64} {
  func.func @_rnn_head_kernel(%arg0: i32, %arg1: memref<8x8x4xf32, #tpu.memory_space<vmem>>, %arg2: memref<8x32xf32, #tpu.memory_space<vmem>>, %arg3: memref<4x32xbf16, #tpu.memory_space<vmem>>, %arg4: memref<32x32xbf16, #tpu.memory_space<vmem>>, %arg5: memref<1x32xf32, #tpu.memory_space<vmem>>, %arg6: memref<32x128xbf16, #tpu.memory_space<vmem>>, %arg7: memref<1x128xf32, #tpu.memory_space<vmem>>, %arg8: memref<8x8x128xf32, #tpu.memory_space<vmem>>, %arg9: memref<8x32xf32, #tpu.memory_space<vmem>>, %arg10: memref<64x32xf32, #tpu.memory_space<vmem>>) attributes {dimension_semantics = [#tpu.dimension_semantics<parallel>], iteration_bounds = array<i64: 1>, scalar_prefetch = 0 : i64, scratch_operands = 1 : i64, tpu.core_type = #tpu.core_type<tc>, window_params = [{transform_indices = @transform_0, window_bounds = array<i64: 8, 8, 4>}, {transform_indices = @transform_1, window_bounds = array<i64: 8, 32>}, {pipeline_mode = #tpu.pipeline_mode<synchronous>, transform_indices = @transform_2, window_bounds = array<i64: 4, 32>}, {pipeline_mode = #tpu.pipeline_mode<synchronous>, transform_indices = @transform_3, window_bounds = array<i64: 32, 32>}, {pipeline_mode = #tpu.pipeline_mode<synchronous>, transform_indices = @transform_4, window_bounds = array<i64: 1, 32>}, {pipeline_mode = #tpu.pipeline_mode<synchronous>, transform_indices = @transform_5, window_bounds = array<i64: 32, 128>}, {pipeline_mode = #tpu.pipeline_mode<synchronous>, transform_indices = @transform_6, window_bounds = array<i64: 1, 128>}, {transform_indices = @transform_7, window_bounds = array<i64: 8, 8, 128>}, {transform_indices = @transform_8, window_bounds = array<i64: 8, 32>}]} {
    %c0 = arith.constant 0 : index
    %c0_0 = arith.constant 0 : index
    %0 = vector.load %arg4[%c0, %c0_0] : memref<32x32xbf16, #tpu.memory_space<vmem>>, vector<32x32xbf16>
    %c0_1 = arith.constant 0 : index
    %c0_2 = arith.constant 0 : index
    %c0_3 = arith.constant 0 : index
    %1 = vector.load %arg1[%c0_1, %c0_2, %c0_3] : memref<8x8x4xf32, #tpu.memory_space<vmem>>, vector<8x8x4xf32>
    %2 = vector.shape_cast %1 : vector<8x8x4xf32> to vector<64x4xf32>
    %3 = arith.truncf %2 : vector<64x4xf32> to vector<64x4xbf16>
    %c0_4 = arith.constant 0 : index
    %c0_5 = arith.constant 0 : index
    %4 = vector.load %arg3[%c0_4, %c0_5] : memref<4x32xbf16, #tpu.memory_space<vmem>>, vector<4x32xbf16>
    %cst = arith.constant dense<0.000000e+00> : vector<64x32xf32>
    %5 = tpu.matmul %3, %4, %cst {dimension_numbers = #tpu.dot_dimension_numbers<[1], [0], [0], [1], [0, 0, 1, 1], [], []>} : vector<64x4xbf16>, vector<4x32xbf16>, vector<64x32xf32> -> vector<64x32xf32>
    %c0_6 = arith.constant 0 : index
    %c0_7 = arith.constant 0 : index
    %6 = vector.load %arg5[%c0_6, %c0_7] : memref<1x32xf32, #tpu.memory_space<vmem>>, vector<1x32xf32>
    %7 = vector.broadcast %6 : vector<1x32xf32> to vector<64x32xf32>
    %8 = arith.addf %5, %7 : vector<64x32xf32>
    %c0_8 = arith.constant 0 : index
    %c0_9 = arith.constant 0 : index
    %9 = vector.load %arg10[%c0_8, %c0_9] : memref<64x32xf32, #tpu.memory_space<vmem>>, vector<64x32xf32>
    tpu.vector_store %arg10[%c0_8, %c0_9], %8 {strides = array<i32>} : memref<64x32xf32, #tpu.memory_space<vmem>>, vector<64x32xf32>,
    %c0_10 = arith.constant 0 : index
    %c0_11 = arith.constant 0 : index
    %10 = vector.load %arg2[%c0_10, %c0_11] : memref<8x32xf32, #tpu.memory_space<vmem>>, vector<8x32xf32>
    %c0_12 = arith.constant 0 : index
    %c0_13 = arith.constant 0 : index
    %11 = vector.load %arg10[%c0_12, %c0_13] : memref<64x32xf32, #tpu.memory_space<vmem>>, vector<8x32xf32>
    %12 = arith.truncf %10 : vector<8x32xf32> to vector<8x32xbf16>
    %cst_14 = arith.constant dense<0.000000e+00> : vector<8x32xf32>
    %13 = tpu.matmul %12, %0, %cst_14 {dimension_numbers = #tpu.dot_dimension_numbers<[1], [0], [0], [1], [0, 0, 1, 1], [], []>} : vector<8x32xbf16>, vector<32x32xbf16>, vector<8x32xf32> -> vector<8x32xf32>
    %14 = arith.addf %11, %13 : vector<8x32xf32>
    %15 = math.tanh %14 : vector<8x32xf32>
    %c0_15 = arith.constant 0 : index
    %c0_16 = arith.constant 0 : index
    %16 = vector.load %arg10[%c0_15, %c0_16] : memref<64x32xf32, #tpu.memory_space<vmem>>, vector<8x32xf32>
    tpu.vector_store %arg10[%c0_15, %c0_16], %15 {strides = array<i32>} : memref<64x32xf32, #tpu.memory_space<vmem>>, vector<8x32xf32>,
    %c8 = arith.constant 8 : index
    %c0_17 = arith.constant 0 : index
    %17 = vector.load %arg10[%c8, %c0_17] : memref<64x32xf32, #tpu.memory_space<vmem>>, vector<8x32xf32>
    %18 = arith.truncf %15 : vector<8x32xf32> to vector<8x32xbf16>
    %cst_18 = arith.constant dense<0.000000e+00> : vector<8x32xf32>
    %19 = tpu.matmul %18, %0, %cst_18 {dimension_numbers = #tpu.dot_dimension_numbers<[1], [0], [0], [1], [0, 0, 1, 1], [], []>} : vector<8x32xbf16>, vector<32x32xbf16>, vector<8x32xf32> -> vector<8x32xf32>
    %20 = arith.addf %17, %19 : vector<8x32xf32>
    %21 = math.tanh %20 : vector<8x32xf32>
    %c8_19 = arith.constant 8 : index
    %c0_20 = arith.constant 0 : index
    %22 = vector.load %arg10[%c8_19, %c0_20] : memref<64x32xf32, #tpu.memory_space<vmem>>, vector<8x32xf32>
    tpu.vector_store %arg10[%c8_19, %c0_20], %21 {strides = array<i32>} : memref<64x32xf32, #tpu.memory_space<vmem>>, vector<8x32xf32>,
    %c16 = arith.constant 16 : index
    %c0_21 = arith.constant 0 : index
    %23 = vector.load %arg10[%c16, %c0_21] : memref<64x32xf32, #tpu.memory_space<vmem>>, vector<8x32xf32>
    %24 = arith.truncf %21 : vector<8x32xf32> to vector<8x32xbf16>
    %cst_22 = arith.constant dense<0.000000e+00> : vector<8x32xf32>
    %25 = tpu.matmul %24, %0, %cst_22 {dimension_numbers = #tpu.dot_dimension_numbers<[1], [0], [0], [1], [0, 0, 1, 1], [], []>} : vector<8x32xbf16>, vector<32x32xbf16>, vector<8x32xf32> -> vector<8x32xf32>
    %26 = arith.addf %23, %25 : vector<8x32xf32>
    %27 = math.tanh %26 : vector<8x32xf32>
    %c16_23 = arith.constant 16 : index
    %c0_24 = arith.constant 0 : index
    %28 = vector.load %arg10[%c16_23, %c0_24] : memref<64x32xf32, #tpu.memory_space<vmem>>, vector<8x32xf32>
    tpu.vector_store %arg10[%c16_23, %c0_24], %27 {strides = array<i32>} : memref<64x32xf32, #tpu.memory_space<vmem>>, vector<8x32xf32>,
    %c24 = arith.constant 24 : index
    %c0_25 = arith.constant 0 : index
    %29 = vector.load %arg10[%c24, %c0_25] : memref<64x32xf32, #tpu.memory_space<vmem>>, vector<8x32xf32>
    %30 = arith.truncf %27 : vector<8x32xf32> to vector<8x32xbf16>
    %cst_26 = arith.constant dense<0.000000e+00> : vector<8x32xf32>
    %31 = tpu.matmul %30, %0, %cst_26 {dimension_numbers = #tpu.dot_dimension_numbers<[1], [0], [0], [1], [0, 0, 1, 1], [], []>} : vector<8x32xbf16>, vector<32x32xbf16>, vector<8x32xf32> -> vector<8x32xf32>
    %32 = arith.addf %29, %31 : vector<8x32xf32>
    %33 = math.tanh %32 : vector<8x32xf32>
    %c24_27 = arith.constant 24 : index
    %c0_28 = arith.constant 0 : index
    %34 = vector.load %arg10[%c24_27, %c0_28] : memref<64x32xf32, #tpu.memory_space<vmem>>, vector<8x32xf32>
    tpu.vector_store %arg10[%c24_27, %c0_28], %33 {strides = array<i32>} : memref<64x32xf32, #tpu.memory_space<vmem>>, vector<8x32xf32>,
    %c32 = arith.constant 32 : index
    %c0_29 = arith.constant 0 : index
    %35 = vector.load %arg10[%c32, %c0_29] : memref<64x32xf32, #tpu.memory_space<vmem>>, vector<8x32xf32>
    %36 = arith.truncf %33 : vector<8x32xf32> to vector<8x32xbf16>
    %cst_30 = arith.constant dense<0.000000e+00> : vector<8x32xf32>
    %37 = tpu.matmul %36, %0, %cst_30 {dimension_numbers = #tpu.dot_dimension_numbers<[1], [0], [0], [1], [0, 0, 1, 1], [], []>} : vector<8x32xbf16>, vector<32x32xbf16>, vector<8x32xf32> -> vector<8x32xf32>
    %38 = arith.addf %35, %37 : vector<8x32xf32>
    %39 = math.tanh %38 : vector<8x32xf32>
    %c32_31 = arith.constant 32 : index
    %c0_32 = arith.constant 0 : index
    %40 = vector.load %arg10[%c32_31, %c0_32] : memref<64x32xf32, #tpu.memory_space<vmem>>, vector<8x32xf32>
    tpu.vector_store %arg10[%c32_31, %c0_32], %39 {strides = array<i32>} : memref<64x32xf32, #tpu.memory_space<vmem>>, vector<8x32xf32>,
    %c40 = arith.constant 40 : index
    %c0_33 = arith.constant 0 : index
    %41 = vector.load %arg10[%c40, %c0_33] : memref<64x32xf32, #tpu.memory_space<vmem>>, vector<8x32xf32>
    %42 = arith.truncf %39 : vector<8x32xf32> to vector<8x32xbf16>
    %cst_34 = arith.constant dense<0.000000e+00> : vector<8x32xf32>
    %43 = tpu.matmul %42, %0, %cst_34 {dimension_numbers = #tpu.dot_dimension_numbers<[1], [0], [0], [1], [0, 0, 1, 1], [], []>} : vector<8x32xbf16>, vector<32x32xbf16>, vector<8x32xf32> -> vector<8x32xf32>
    %44 = arith.addf %41, %43 : vector<8x32xf32>
    %45 = math.tanh %44 : vector<8x32xf32>
    %c40_35 = arith.constant 40 : index
    %c0_36 = arith.constant 0 : index
    %46 = vector.load %arg10[%c40_35, %c0_36] : memref<64x32xf32, #tpu.memory_space<vmem>>, vector<8x32xf32>
    tpu.vector_store %arg10[%c40_35, %c0_36], %45 {strides = array<i32>} : memref<64x32xf32, #tpu.memory_space<vmem>>, vector<8x32xf32>,
    %c48 = arith.constant 48 : index
    %c0_37 = arith.constant 0 : index
    %47 = vector.load %arg10[%c48, %c0_37] : memref<64x32xf32, #tpu.memory_space<vmem>>, vector<8x32xf32>
    %48 = arith.truncf %45 : vector<8x32xf32> to vector<8x32xbf16>
    %cst_38 = arith.constant dense<0.000000e+00> : vector<8x32xf32>
    %49 = tpu.matmul %48, %0, %cst_38 {dimension_numbers = #tpu.dot_dimension_numbers<[1], [0], [0], [1], [0, 0, 1, 1], [], []>} : vector<8x32xbf16>, vector<32x32xbf16>, vector<8x32xf32> -> vector<8x32xf32>
    %50 = arith.addf %47, %49 : vector<8x32xf32>
    %51 = math.tanh %50 : vector<8x32xf32>
    %c48_39 = arith.constant 48 : index
    %c0_40 = arith.constant 0 : index
    %52 = vector.load %arg10[%c48_39, %c0_40] : memref<64x32xf32, #tpu.memory_space<vmem>>, vector<8x32xf32>
    tpu.vector_store %arg10[%c48_39, %c0_40], %51 {strides = array<i32>} : memref<64x32xf32, #tpu.memory_space<vmem>>, vector<8x32xf32>,
    %c56 = arith.constant 56 : index
    %c0_41 = arith.constant 0 : index
    %53 = vector.load %arg10[%c56, %c0_41] : memref<64x32xf32, #tpu.memory_space<vmem>>, vector<8x32xf32>
    %54 = arith.truncf %51 : vector<8x32xf32> to vector<8x32xbf16>
    %cst_42 = arith.constant dense<0.000000e+00> : vector<8x32xf32>
    %55 = tpu.matmul %54, %0, %cst_42 {dimension_numbers = #tpu.dot_dimension_numbers<[1], [0], [0], [1], [0, 0, 1, 1], [], []>} : vector<8x32xbf16>, vector<32x32xbf16>, vector<8x32xf32> -> vector<8x32xf32>
    %56 = arith.addf %53, %55 : vector<8x32xf32>
    %57 = math.tanh %56 : vector<8x32xf32>
    %c56_43 = arith.constant 56 : index
    %c0_44 = arith.constant 0 : index
    %58 = vector.load %arg10[%c56_43, %c0_44] : memref<64x32xf32, #tpu.memory_space<vmem>>, vector<8x32xf32>
    tpu.vector_store %arg10[%c56_43, %c0_44], %57 {strides = array<i32>} : memref<64x32xf32, #tpu.memory_space<vmem>>, vector<8x32xf32>,
    %c0_45 = arith.constant 0 : index
    %c0_46 = arith.constant 0 : index
    %59 = vector.load %arg9[%c0_45, %c0_46] : memref<8x32xf32, #tpu.memory_space<vmem>>, vector<8x32xf32>
    tpu.vector_store %arg9[%c0_45, %c0_46], %57 {strides = array<i32>} : memref<8x32xf32, #tpu.memory_space<vmem>>, vector<8x32xf32>,
    %c0_47 = arith.constant 0 : index
    %c0_48 = arith.constant 0 : index
    %60 = vector.load %arg10[%c0_47, %c0_48] : memref<64x32xf32, #tpu.memory_space<vmem>>, vector<64x32xf32>
    %61 = arith.truncf %60 : vector<64x32xf32> to vector<64x32xbf16>
    %c0_49 = arith.constant 0 : index
    %c0_50 = arith.constant 0 : index
    %62 = vector.load %arg6[%c0_49, %c0_50] : memref<32x128xbf16, #tpu.memory_space<vmem>>, vector<32x128xbf16>
    %cst_51 = arith.constant dense<0.000000e+00> : vector<64x128xf32>
    %63 = tpu.matmul %61, %62, %cst_51 {dimension_numbers = #tpu.dot_dimension_numbers<[1], [0], [0], [1], [0, 0, 1, 1], [], []>} : vector<64x32xbf16>, vector<32x128xbf16>, vector<64x128xf32> -> vector<64x128xf32>
    %c0_52 = arith.constant 0 : index
    %c0_53 = arith.constant 0 : index
    %64 = vector.load %arg7[%c0_52, %c0_53] : memref<1x128xf32, #tpu.memory_space<vmem>>, vector<1x128xf32>
    %65 = vector.broadcast %64 : vector<1x128xf32> to vector<64x128xf32>
    %66 = arith.addf %63, %65 : vector<64x128xf32>
    %67 = vector.shape_cast %66 : vector<64x128xf32> to vector<8x8x128xf32>
    %c0_54 = arith.constant 0 : index
    %c0_55 = arith.constant 0 : index
    %c0_56 = arith.constant 0 : index
    %68 = vector.load %arg8[%c0_54, %c0_55, %c0_56] : memref<8x8x128xf32, #tpu.memory_space<vmem>>, vector<8x8x128xf32>
    tpu.vector_store %arg8[%c0_54, %c0_55, %c0_56], %67 {strides = array<i32>} : memref<8x8x128xf32, #tpu.memory_space<vmem>>, vector<8x8x128xf32>,
    return
  }
  func.func @transform_0(%arg0: i32) -> (i32, i32, i32) {
    %c0_i32 = arith.constant 0 : i32
    %c0_i32_0 = arith.constant 0 : i32
    %c0_i32_1 = arith.constant 0 : i32
    return %c0_i32, %arg0, %c0_i32_0 : i32, i32, i32
  }
  func.func @transform_1(%arg0: i32) -> (i32, i32) {
    %c0_i32 = arith.constant 0 : i32
    %c0_i32_0 = arith.constant 0 : i32
    return %arg0, %c0_i32 : i32, i32
  }
  func.func @transform_2(%arg0: i32) -> (i32, i32) {
    %c0_i32 = arith.constant 0 : i32
    %c0_i32_0 = arith.constant 0 : i32
    %c0_i32_1 = arith.constant 0 : i32
    return %c0_i32, %c0_i32_0 : i32, i32
  }
  func.func @transform_3(%arg0: i32) -> (i32, i32) {
    %c0_i32 = arith.constant 0 : i32
    %c0_i32_0 = arith.constant 0 : i32
    %c0_i32_1 = arith.constant 0 : i32
    return %c0_i32, %c0_i32_0 : i32, i32
  }
  func.func @transform_4(%arg0: i32) -> (i32, i32) {
    %c0_i32 = arith.constant 0 : i32
    %c0_i32_0 = arith.constant 0 : i32
    %c0_i32_1 = arith.constant 0 : i32
    return %c0_i32, %c0_i32_0 : i32, i32
  }
  func.func @transform_5(%arg0: i32) -> (i32, i32) {
    %c0_i32 = arith.constant 0 : i32
    %c0_i32_0 = arith.constant 0 : i32
    %c0_i32_1 = arith.constant 0 : i32
    return %c0_i32, %c0_i32_0 : i32, i32
  }
  func.func @transform_6(%arg0: i32) -> (i32, i32) {
    %c0_i32 = arith.constant 0 : i32
    %c0_i32_0 = arith.constant 0 : i32
    %c0_i32_1 = arith.constant 0 : i32
    return %c0_i32, %c0_i32_0 : i32, i32
  }
  func.func @transform_7(%arg0: i32) -> (i32, i32, i32) {
    %c0_i32 = arith.constant 0 : i32
    %c0_i32_0 = arith.constant 0 : i32
    %c0_i32_1 = arith.constant 0 : i32
    return %c0_i32, %arg0, %c0_i32_0 : i32, i32, i32
  }
  func.func @transform_8(%arg0: i32) -> (i32, i32) {
    %c0_i32 = arith.constant 0 : i32
    %c0_i32_0 = arith.constant 0 : i32
    return %arg0, %c0_i32 : i32, i32
  }
}

</mosaic_0001>

<bundles_post_ra>
// kernel: tpu_custom_call.1
= control target key start
LH: loop header
LB: loop body
LE: loop exit
PB: predicated region body
PF: predicated region fallthrough
CT: control target
= control target key end

     0   :  { %14 = vsyncpa [#allocation4], 0  ;;  %vm68_vm0 = vcmask 1041408   ;;  %vm55_vm1 = vcmask 31744   ;;  %v915_v14 = vmov 0.0   ;;  %vm916_vm2 = vmmov 0   ;;  %s1123_s0 = inlined_call_operand.vmem [shape: f32[8,8,4], index: 0, kind: input, shape index: {}]   ;;  %s1124_s1 = inlined_call_operand.vmem [shape: f32[8,32], index: 1, kind: input, shape index: {}]   ;;  %s1125_s2 = inlined_call_operand.vmem [shape: bf16[4,32], index: 2, kind: input, shape index: {}]   ;;  %s1126_s3 = inlined_call_operand.vmem [shape: bf16[32,32], index: 3, kind: input, shape index: {}]   ;;  %s1127_s4 = inlined_call_operand.vmem [shape: f32[1,32], index: 4, kind: input, shape index: {}]   ;;  %s1128_s5 = inlined_call_operand.vmem [shape: bf16[32,128], index: 5, kind: input, shape index: {}]   ;;  %s1129_s6 = inlined_call_operand.vmem [shape: f32[1,128], index: 6, kind: input, shape index: {}]   ;;  %s1130_s7 = inlined_call_operand.hbm [shape: f32[8,8,128], index: 7, kind: output, shape index: {0}]   ;;  %s1131_s8 = inlined_call_operand.hbm [shape: f32[8,32], index: 8, kind: output, shape index: {1}]  }
   0x1   :  { %v47_v0 = vld [vmem:[%s1125_s2] sm:$0x3]  ;;  %v36_v2 = vld [vmem:[%s1123_s0 + $0x8] sm:$0xff]  ;;  %v37_v7 = vld [vmem:[%s1123_s0 + $0x10] sm:$0xff] }
   0x2   :  { %v35_v1 = vld [vmem:[%s1123_s0] sm:$0xff]  ;;  %839 = vmatprep.subr.msk.bf16.mxu0 %vm68_vm0, %v47_v0  ;;  %840 = vmatprep.subr.msk.bf16.mxu1 %vm68_vm0, %v47_v0  ;;  %v70_v3 = vsel %vm68_vm0, %v47_v0, 0  ;;  %v40_v6 = vld [vmem:[%s1123_s0 + $0x28] sm:$0xff]  ;;  %v38_v9 = vld [vmem:[%s1123_s0 + $0x18] sm:$0xff] }
   0x3   :  { %v43_v4 = vpack.c.bf16 %v36_v2, %v35_v1  ;;  %v39_v5 = vld [vmem:[%s1123_s0 + $0x20] sm:$0xff]  ;;  %752 = vmatpush3.bf16.msra.mxu0 %v70_v3  ;;  %838 = vmatpush3.bf16.msra.mxu1 %v70_v3  ;;  %v41_v10 = vld [vmem:[%s1123_s0 + $0x30] sm:$0xff]  ;;  %v42_v11 = vld [vmem:[%s1123_s0 + $0x38] sm:$0xff]  ;;  %v44_v12 = vpack.c.bf16 %v38_v9, %v37_v7 }
   0x4   :  { %v45_v8 = vpack.c.bf16 %v40_v6, %v39_v5  ;;  %v46_v13 = vpack.c.bf16 %v42_v11, %v41_v10  ;;  %761 = vmatprep.subr.bf16.mxu1 %v915_v14  ;;  %v998_v15 = vld [vmem:[%s1126_s3] sm:$0xff]   ;;  %v1004_v16 = vld [vmem:[%s1126_s3 + $0x8] sm:$0xff]   ;;  %777 = vmatprep.subr.bf16.mxu0 %v915_v14 }
   0x5   :  { %753 = vmatprep.mubr.msk.bf16.mxu0 %vm55_vm1, %v43_v4  ;;  %v146_v17 = vld [vmem:[%s1124_s1] sm:$0xff] }
   0x6   :  { %757 = vmatprep.mubr.msk.bf16.mxu1 %vm55_vm1, %v45_v8  ;;  %754 = vmatmul.mubr.msk.bf16.vlgmr.msra.gmra.mrb[0].mxu0 %vm55_vm1, %v44_v12 }
   0x7   :  { %758 = vmatmul.mubr.msk.bf16.vlgmr.msra.gmra.mrb[0].mxu1 %vm55_vm1, %v46_v13 }
   0x8   :  { %762 = vmatpush3.bf16.msra.mxu1 %v998_v15  ;;  %765 = vmatprep.mubr.msk.bf16.mxu1 %vm916_vm2, %v915_v14 }
   0x9   :  { %15 = vsyncpa [#allocation6], 0  ;;  %763 = vmatprep.subr.bf16.mxu1 %v915_v14  ;;  %778 = vmatpush3.bf16.msra.mxu0 %v998_v15  ;;  %v148_v18 = vpack.c.bf16 %v146_v17, %v146_v17  ;;  %vm137_vm3 = vcmask 261120   ;;  %v694_v19 = vld [vmem:[%s1127_s4] ss:$0 sm:$0xff] }
   0xa   :  { %779 = vmatprep.subr.bf16.mxu0 %v915_v14  ;;  %781 = vmatprep.mubr.msk.bf16.mxu0 %vm916_vm2, %v915_v14  ;;  %v849_v12 = vld [vmem:[%s1128_s5] sm:$0xff]  }
   0xc   :  { %764 = vmatpush3.bf16.msra.mxu1 %v1004_v16 }
   0xd   :  { %769 = vmatprep.subr.bf16.mxu1 %v915_v14  ;;  %780 = vmatpush3.bf16.msra.mxu0 %v1004_v16 }
   0xe   :  { %793 = vmatprep.subr.bf16.mxu0 %v915_v14 }
   0xf   :  { %766 = vmatmul.mubr.msk.bf16.vlgmr.msra.gmra.mrb[4].mxu1 %vm137_vm3, %v148_v18 }
  0x10   :  { %770 = vmatpush3.bf16.msra.mxu1 %v998_v15  ;;  %773 = vmatprep.mubr.msk.bf16.mxu1 %vm916_vm2, %v915_v14 }
  0x11   :  { %771 = vmatprep.subr.bf16.mxu1 %v915_v14 }
  0x14   :  { %772 = vmatpush3.bf16.msra.mxu1 %v1004_v16 }
  0x15   :  { %785 = vmatprep.subr.bf16.mxu1 %v915_v14 }
  0xd9   :  { %v755_v20 = vpop.f32.mrb[0].mxu0 }
  0xda   :  { %v759_v21 = vpop.f32.mrb[0].mxu1  ;;  %v115_v22 = vadd.f32 %v755_v20, %v694_v19  ;;  %v106_v24 = vpop.f32.mrb[1].mxu0 }
  0xdb   :  { %v131_v23 = vadd.f32 %v759_v21, %v694_v19  ;;  %v122_v25 = vpop.f32.mrb[1].mxu1  ;;  %v107_v26 = vadd.f32 %v694_v19, %v106_v24  ;;  %v756_v28 = vpop.f32.mrb[2].mxu0 }
  0xdc   :  { %v123_v27 = vadd.f32 %v694_v19, %v122_v25  ;;  %v760_v29 = vpop.f32.mrb[2].mxu1  ;;  %140 = vst.msk [vmem:[#allocation2 + $0x10] sm:$0xff] %vm137_vm3, %v115_v22  ;;  %v118_v30 = vadd.f32 %v756_v28, %v694_v19  ;;  %v109_v32 = vpop.f32.mrb[3].mxu0 }
  0xdd   :  { %144 = vst.msk [vmem:[#allocation2 + $0x30] sm:$0xff] %vm137_vm3, %v131_v23  ;;  %v134_v31 = vadd.f32 %v760_v29, %v694_v19  ;;  %v125_v33 = vpop.f32.mrb[3].mxu1  ;;  %138 = vst.msk [vmem:[#allocation2] sm:$0xff] %vm137_vm3, %v107_v26  ;;  %v110_v34 = vadd.f32 %v694_v19, %v109_v32 }
  0xde   :  { %142 = vst.msk [vmem:[#allocation2 + $0x20] sm:$0xff] %vm137_vm3, %v123_v27  ;;  %v126_v35 = vadd.f32 %v694_v19, %v125_v33  ;;  %141 = vst.msk [vmem:[#allocation2 + $0x18] sm:$0xff] %vm137_vm3, %v118_v30 }
  0xdf   :  { %145 = vst.msk [vmem:[#allocation2 + $0x38] sm:$0xff] %vm137_vm3, %v134_v31  ;;  %139 = vst.msk [vmem:[#allocation2 + $0x8] sm:$0xff] %vm137_vm3, %v110_v34 }
  0xe0   :  { %143 = vst.msk [vmem:[#allocation2 + $0x28] sm:$0xff] %vm137_vm3, %v126_v35 }
  0xe2   :  { %v198_v36 = vpop.f32.mrb[4].mxu1 }
  0xe3   :  { %v767_v37 = vpop.f32.mrb[5].mxu1  ;;  %v255_v52 = vld [vmem:[#allocation2 + $0x10] sm:$0xff] }
  0xe4   :  { %v201_v38 = vpop.f32.mrb[6].mxu1  ;;  %v147_v39 = vld [vmem:[#allocation2] sm:$0xff]  ;;  %v447_v31 = vld [vmem:[#allocation2 + $0x30] sm:$0xff] }
  0xe5   :  { %v768_v40 = vpop.f32.mrb[7].mxu1  ;;  %v204_v41 = vadd.f32 %v198_v36, %v147_v39  ;;  %v303_v60 = vld [vmem:[#allocation2 + $0x18] sm:$0xff]  ;;  %v351_v4 = vld [vmem:[#allocation2 + $0x20] sm:$0xff] }
  0xe6   :  { %v207_v44 = vld [vmem:[#allocation2 + $0x8] sm:$0xff]  ;;  %v709_v37 = vld [vmem:[%s1129_s6] ss:$0 sm:$0xff]  ;;  %s917_s6 = smov [#allocation5]  }
  0xe7   :  { %851 = vtanh.f32 %v204_v41  ;;  %v399_v13 = vld [vmem:[#allocation2 + $0x28] sm:$0xff]  ;;  %s682_s9 = sshll.u32 %s917_s6, 4  ;;  %s683_s9 = int_to_ptr.vmem [resolvable:$true] %s682_s9 }
  0xe8   :  { %s867_s10 = scalar_lea.vmem %s683_s9, 128  ;;  %p872_p1 = scmp.lt.s32.totalorder %s683_s9, %s683_s9 }
  0xe9   :  { %p868_p0 = scmp.ne.s32.totalorder %s683_s9, %s867_s10  ;;  %p873_p2 = scmp.lt.s32.totalorder %s867_s10, %s867_s10 }
  0xeb   :  { %p874_p3 = por %p873_p2, %p872_p1 }
  0xed   :  { %p875_p4 = pnand %p874_p3, %p868_p0 }
  0xf1   :  { %v852_v42 = vpop.eup %851 }
  0xf2   :  { %206 = vst.msk [vmem:[#allocation2] sm:$0xff] %vm137_vm3, %v852_v42  ;;  %v208_v43 = vpack.c.bf16 %v852_v42, %v852_v42 }
  0xf4   :  { %774 = vmatmul.mubr.msk.bf16.vlgmr.msra.gmra.mrb[8].mxu1 %vm137_vm3, %v208_v43 }
  0xf5   :  { %786 = vmatpush3.bf16.msra.mxu1 %v998_v15  ;;  %789 = vmatprep.mubr.msk.bf16.mxu1 %vm916_vm2, %v915_v14 }
  0xf6   :  { %787 = vmatprep.subr.bf16.mxu1 %v915_v14 }
  0xf9   :  { %788 = vmatpush3.bf16.msra.mxu1 %v1004_v16 }
  0xfa   :  { %801 = vmatprep.subr.bf16.mxu1 %v915_v14 }
 0x1c7   :  { %v246_v45 = vpop.f32.mrb[8].mxu1 }
 0x1c8   :  { %v252_v46 = vadd.f32 %v246_v45, %v207_v44  ;;  %v775_v47 = vpop.f32.mrb[9].mxu1 }
 0x1c9   :  { %v249_v48 = vpop.f32.mrb[10].mxu1 }
 0x1ca   :  { %853 = vtanh.f32 %v252_v46  ;;  %v776_v49 = vpop.f32.mrb[11].mxu1  ;;  %v495_v48 = vld [vmem:[#allocation2 + $0x38] sm:$0xff] }
 0x1d4   :  { %v854_v50 = vpop.eup %853 }
 0x1d5   :  { %254 = vst.msk [vmem:[#allocation2 + $0x8] sm:$0xff] %vm137_vm3, %v854_v50  ;;  %v256_v51 = vpack.c.bf16 %v854_v50, %v854_v50 }
 0x1d7   :  { %782 = vmatmul.mubr.msk.bf16.vlgmr.msra.gmra.mrb[4].mxu0 %vm137_vm3, %v256_v51 }
 0x1d8   :  { %794 = vmatpush3.bf16.msra.mxu0 %v998_v15  ;;  %797 = vmatprep.mubr.msk.bf16.mxu0 %vm916_vm2, %v915_v14 }
 0x1d9   :  { %795 = vmatprep.subr.bf16.mxu0 %v915_v14 }
 0x1dc   :  { %796 = vmatpush3.bf16.msra.mxu0 %v1004_v16 }
 0x1dd   :  { %809 = vmatprep.subr.bf16.mxu0 %v915_v14 }
 0x2aa   :  { %v294_v53 = vpop.f32.mrb[4].mxu0 }
 0x2ab   :  { %v300_v54 = vadd.f32 %v294_v53, %v255_v52  ;;  %v783_v55 = vpop.f32.mrb[5].mxu0 }
 0x2ac   :  { %v297_v56 = vpop.f32.mrb[6].mxu0 }
 0x2ad   :  { %855 = vtanh.f32 %v300_v54  ;;  %v784_v57 = vpop.f32.mrb[7].mxu0 }
 0x2b7   :  { %v856_v58 = vpop.eup %855 }
 0x2b8   :  { %302 = vst.msk [vmem:[#allocation2 + $0x10] sm:$0xff] %vm137_vm3, %v856_v58  ;;  %v304_v59 = vpack.c.bf16 %v856_v58, %v856_v58 }
 0x2ba   :  { %790 = vmatmul.mubr.msk.bf16.vlgmr.msra.gmra.mrb[12].mxu1 %vm137_vm3, %v304_v59 }
 0x2bb   :  { %802 = vmatpush3.bf16.msra.mxu1 %v998_v15  ;;  %805 = vmatprep.mubr.msk.bf16.mxu1 %vm916_vm2, %v915_v14 }
 0x2bc   :  { %803 = vmatprep.subr.bf16.mxu1 %v915_v14 }
 0x2bf   :  { %804 = vmatpush3.bf16.msra.mxu1 %v1004_v16  ;;  %v546_v26 = vld [vmem:[#allocation2 + $0x10] sm:$0xff] }
 0x2c0   :  { %817 = vmatprep.subr.bf16.mxu1 %v915_v14 }
 0x38d   :  { %v342_v61 = vpop.f32.mrb[12].mxu1 }
 0x38e   :  { %v348_v62 = vadd.f32 %v342_v61, %v303_v60  ;;  %v791_v63 = vpop.f32.mrb[13].mxu1 }
 0x38f   :  { %v345_v0 = vpop.f32.mrb[14].mxu1 }
 0x390   :  { %857 = vtanh.f32 %v348_v62  ;;  %v792_v1 = vpop.f32.mrb[15].mxu1 }
 0x39a   :  { %v858_v2 = vpop.eup %857 }
 0x39b   :  { %350 = vst.msk [vmem:[#allocation2 + $0x18] sm:$0xff] %vm137_vm3, %v858_v2  ;;  %v352_v3 = vpack.c.bf16 %v858_v2, %v858_v2 }
 0x39d   :  { %798 = vmatmul.mubr.msk.bf16.vlgmr.msra.gmra.mrb[8].mxu0 %vm137_vm3, %v352_v3 }
 0x39e   :  { %810 = vmatpush3.bf16.msra.mxu0 %v998_v15  ;;  %813 = vmatprep.mubr.msk.bf16.mxu0 %vm916_vm2, %v915_v14 }
 0x39f   :  { %811 = vmatprep.subr.bf16.mxu0 %v915_v14 }
 0x3a2   :  { %812 = vmatpush3.bf16.msra.mxu0 %v1004_v16  ;;  %v547_v25 = vld [vmem:[#allocation2 + $0x18] sm:$0xff] }
 0x3a3   :  { %825 = vmatprep.subr.bf16.mxu0 %v849_v12  ;;  %v553_v29 = vpack.c.bf16 %v547_v25, %v546_v26 }
 0x470   :  { %v390_v5 = vpop.f32.mrb[8].mxu0 }
 0x471   :  { %v396_v6 = vadd.f32 %v390_v5, %v351_v4  ;;  %v799_v7 = vpop.f32.mrb[9].mxu0 }
 0x472   :  { %v393_v8 = vpop.f32.mrb[10].mxu0 }
 0x473   :  { %859 = vtanh.f32 %v396_v6  ;;  %v800_v9 = vpop.f32.mrb[11].mxu0 }
 0x47d   :  { %v860_v10 = vpop.eup %859 }
 0x47e   :  { %398 = vst.msk [vmem:[#allocation2 + $0x20] sm:$0xff] %vm137_vm3, %v860_v10  ;;  %v400_v11 = vpack.c.bf16 %v860_v10, %v860_v10 }
 0x480   :  { %806 = vmatmul.mubr.msk.bf16.vlgmr.msra.gmra.mrb[16].mxu1 %vm137_vm3, %v400_v11 }
 0x481   :  { %818 = vmatpush3.bf16.msra.mxu1 %v998_v15  ;;  %821 = vmatprep.mubr.msk.bf16.mxu1 %vm916_vm2, %v915_v14  ;;  %v545_v15 = vld [vmem:[#allocation2 + $0x8] sm:$0xff] }
 0x482   :  { %819 = vmatprep.subr.bf16.mxu1 %v915_v14  ;;  %v544_v14 = vld [vmem:[#allocation2] sm:$0xff] }
 0x483   :  { %v552_v24 = vpack.c.bf16 %v545_v15, %v544_v14 }
 0x485   :  { %820 = vmatpush3.bf16.msra.mxu1 %v1004_v16  ;;  %v850_v16 = vld [vmem:[%s1128_s5 + $0x8] sm:$0xff]   ;;  %v548_v27 = vld [vmem:[#allocation2 + $0x20] sm:$0xff] }
 0x553   :  { %v438_v17 = vpop.f32.mrb[16].mxu1 }
 0x554   :  { %v444_v18 = vadd.f32 %v438_v17, %v399_v13  ;;  %v807_v19 = vpop.f32.mrb[17].mxu1 }
 0x555   :  { %v441_v20 = vpop.f32.mrb[18].mxu1 }
 0x556   :  { %861 = vtanh.f32 %v444_v18  ;;  %v808_v21 = vpop.f32.mrb[19].mxu1 }
 0x560   :  { %v862_v22 = vpop.eup %861 }
 0x561   :  { %446 = vst.msk [vmem:[#allocation2 + $0x28] sm:$0xff] %vm137_vm3, %v862_v22  ;;  %v448_v23 = vpack.c.bf16 %v862_v22, %v862_v22 }
 0x563   :  { %814 = vmatmul.mubr.msk.bf16.vlgmr.msra.gmra.mrb[12].mxu0 %vm137_vm3, %v448_v23 }
 0x564   :  { %826 = vmatpush3.bf16.msra.mxu0 %v849_v12  ;;  %829 = vmatprep.mubr.msk.bf16.mxu0 %vm137_vm3, %v552_v24 }
 0x565   :  { %827 = vmatprep.subr.bf16.mxu0 %v850_v16 }
 0x568   :  { %828 = vmatpush3.bf16.msra.mxu0 %v850_v16  ;;  %v549_v28 = vld [vmem:[#allocation2 + $0x28] sm:$0xff] }
 0x569   :  { %v554_v30 = vpack.c.bf16 %v549_v28, %v548_v27 }
 0x56b   :  { %830 = vmatmul.mubr.msk.bf16.vlgmr.msra.gmra.mrb[16].mxu0 %vm137_vm3, %v553_v29 }
 0x56c   :  { %833 = vmatprep.mubr.msk.bf16.mxu0 %vm137_vm3, %v554_v30 }
 0x636   :  { %v486_v32 = vpop.f32.mrb[12].mxu0 }
 0x637   :  { %v492_v33 = vadd.f32 %v486_v32, %v447_v31  ;;  %v815_v34 = vpop.f32.mrb[13].mxu0 }
 0x638   :  { %v489_v35 = vpop.f32.mrb[14].mxu0 }
 0x639   :  { %863 = vtanh.f32 %v492_v33  ;;  %v816_v36 = vpop.f32.mrb[15].mxu0 }
 0x63e   :  { %v831_v38 = vpop.f32.mrb[16].mxu0 }
 0x63f   :  { %v634_v39 = vadd.f32 %v831_v38, %v709_v37  ;;  %v625_v40 = vpop.f32.mrb[17].mxu0 }
 0x640   :  { %v626_v41 = vadd.f32 %v709_v37, %v625_v40  ;;  %v832_v42 = vpop.f32.mrb[18].mxu0 }
 0x641   :  { %658 = vst [vmem:[#allocation3 + $0x10] sm:$0xff] %v634_v39  ;;  %v637_v43 = vadd.f32 %v832_v42, %v709_v37  ;;  %v628_v44 = vpop.f32.mrb[19].mxu0 }
 0x642   :  { %656 = vst [vmem:[#allocation3] sm:$0xff] %v626_v41  ;;  %v629_v45 = vadd.f32 %v709_v37, %v628_v44 }
 0x643   :  { %v864_v46 = vpop.eup %863  ;;  %659 = vst [vmem:[#allocation3 + $0x18] sm:$0xff] %v637_v43 }
 0x644   :  { %494 = vst.msk [vmem:[#allocation2 + $0x30] sm:$0xff] %vm137_vm3, %v864_v46  ;;  %657 = vst [vmem:[#allocation3 + $0x8] sm:$0xff] %v629_v45  ;;  %v496_v47 = vpack.c.bf16 %v864_v46, %v864_v46 }
 0x646   :  { %822 = vmatmul.mubr.msk.bf16.vlgmr.msra.gmra.mrb[20].mxu1 %vm137_vm3, %v496_v47 }
 0x64b   :  { %v550_v55 = vld [vmem:[#allocation2 + $0x30] sm:$0xff] }
 0x719   :  { %v534_v49 = vpop.f32.mrb[20].mxu1 }
 0x71a   :  { %v540_v50 = vadd.f32 %v534_v49, %v495_v48  ;;  %v823_v51 = vpop.f32.mrb[21].mxu1 }
 0x71b   :  { %v537_v52 = vpop.f32.mrb[22].mxu1 }
 0x71c   :  { %865 = vtanh.f32 %v540_v50  ;;  %v824_v53 = vpop.f32.mrb[23].mxu1 }
 0x726   :  { %v866_v54 = vpop.eup %865 }
 0x727   :  { %542 = vst.msk [vmem:[#allocation2 + $0x38] sm:$0xff] %vm137_vm3, %v866_v54  ;;  %543 = vst.msk [vmem:[#allocation5] sm:$0xff] %vm137_vm3, %v866_v54 }
 0x72e   :  { %v551_v56 = vld [vmem:[#allocation2 + $0x38] sm:$0xff] }
 0x72f   :  { %v555_v57 = vpack.c.bf16 %v551_v56, %v550_v55 }
 0x731   :  { %834 = vmatmul.mubr.msk.bf16.gmra.mrb[20].mxu0 %vm137_vm3, %v555_v57 }
 0x732   :  { %878 = shalt.err (!%p875_p4)
}
 0x733   :  { %s879_s13 = scalar_lea.hbm %s1131_s8, 128 }
 0x734   :  { %p880_p5 = scmp.ne.s32.totalorder %s1131_s8, %s879_s13  ;;  %p883_p6 = scmp.lt.u32.totalorder %s879_s13, %s1131_s8 }
 0x736   :  { %p885_p7 = pnand %p883_p6, %p880_p5 }
 0x738   :  { %888 = shalt.err (!%p885_p7)
}
 0x739   :  { %685 = dma.vmem_to_hbm [thread:$0]  %s683_s9, 128, %s1131_s8, [#allocation6]  }
 0x73a   :  { %s918_s19 = smov [#allocation3]  }
 0x73b   :  { %s669_s20 = sshll.u32 %s918_s19, 4  ;;  %s670_s20 = int_to_ptr.vmem [resolvable:$true] %s669_s20 }
 0x73c   :  { %s889_s21 = scalar_lea.vmem %s670_s20, 1024  ;;  %p894_p9 = scmp.lt.s32.totalorder %s670_s20, %s670_s20 }
 0x73d   :  { %p890_p8 = scmp.ne.s32.totalorder %s670_s20, %s889_s21  ;;  %p895_p10 = scmp.lt.s32.totalorder %s889_s21, %s889_s21 }
 0x73f   :  { %p896_p11 = por %p895_p10, %p894_p9 }
 0x741   :  { %p897_p12 = pnand %p896_p11, %p890_p8 }
 0x804   :  { %v835_v58 = vpop.f32.mrb[20].mxu0 }
 0x805   :  { %v650_v59 = vadd.f32 %v835_v58, %v709_v37  ;;  %v641_v60 = vpop.f32.mrb[21].mxu0 }
 0x806   :  { %v642_v61 = vadd.f32 %v709_v37, %v641_v60  ;;  %v836_v62 = vpop.f32.mrb[22].mxu0 }
 0x807   :  { %662 = vst [vmem:[#allocation3 + $0x30] sm:$0xff] %v650_v59  ;;  %v653_v63 = vadd.f32 %v836_v62, %v709_v37  ;;  %v644_v0 = vpop.f32.mrb[23].mxu0 }
 0x808   :  { %660 = vst [vmem:[#allocation3 + $0x20] sm:$0xff] %v642_v61  ;;  %v645_v1 = vadd.f32 %v709_v37, %v644_v0 }
 0x809   :  { %663 = vst [vmem:[#allocation3 + $0x38] sm:$0xff] %v653_v63 }
 0x80a   :  { %661 = vst [vmem:[#allocation3 + $0x28] sm:$0xff] %v645_v1 }
 0x80b   :  { %900 = shalt.err (!%p897_p12)
}
 0x80c   :  { %s901_s23 = scalar_lea.hbm %s1130_s7, 1024 }
 0x80d   :  { %p902_p13 = scmp.ne.s32.totalorder %s1130_s7, %s901_s23  ;;  %p905_p0 = scmp.lt.u32.totalorder %s901_s23, %s1130_s7 }
 0x80f   :  { %p907_p1 = pnand %p905_p0, %p902_p13 }
 0x811   :  { %910 = shalt.err (!%p907_p1)
}
 0x812   :  { %s919_s1 = smov 128   ;;  %s920_s3 = smov 8  }
 0x813   :  { %675 = dma.vmem_to_hbm [thread:$0]  %s670_s20, 1024, %s1130_s7, [#allocation4], %s919_s1, %s919_s1, %s920_s3  }
 0x814   :  { %911 = dma.done.wait [#allocation4], 1024  }
 0x815   :  { %912 = vsyncadd [#allocation4], 4294966272 }
 0x816   :  { %913 = dma.done.wait [#allocation6], 128  }
 0x817   :  { %914 = vsyncadd [#allocation6], 4294967168 }
 0x818   :  { %692 = vsyncpa [#allocation4], 1 }
 0x819   :  { %693 = vsyncpa [#allocation6], 1 }

</bundles_post_ra>
